<compile_context>
chip_gen: v7x
topology: tpu7x:2x2x1
jax: 0.10.0
libtpu: 0.0.40
codegen_flags: <defaults>
</compile_context>

<pallas_src>
import functools

import jax
import jax.numpy as jnp
import numpy as np
from jax.experimental import pallas as pl
from jax.experimental.pallas import tpu as pltpu


NEG_SLOPE = 0.01          # torch.nn.LeakyReLU default
LANE = 128                # TPU lane width
SUBLANE = 8               # f32 sublane count


def _round_up(x, m):
    return ((x + m - 1) // m) * m


def cal_size_list(in_channels, out_channels, layer_num):
    return np.linspace(in_channels, out_channels, layer_num + 1, dtype="int")


# ----------------------------------------------------------------------------
# Kernel: one batch tile through the whole MLP (weights resident in VMEM).
# refs = (x, w0, b0, w1, b1, ..., w_{L-1}, b_{L-1}, o)
# ----------------------------------------------------------------------------
def _mlp_kernel(*refs, num_layers, use_bf16):
    x_ref = refs[0]
    o_ref = refs[-1]
    h = x_ref[...].astype(jnp.float32)
    for l in range(num_layers):                      # static unroll (L is tiny)
        w = refs[1 + 2 * l][...]
        b = refs[2 + 2 * l][...].astype(jnp.float32)
        if use_bf16:                                 # opt-in: ~3x MXU on v6e/v7x
            y = jnp.dot(h.astype(jnp.bfloat16), w.astype(jnp.bfloat16),
                        preferred_element_type=jnp.float32)
        else:
            y = jnp.dot(h, w.astype(jnp.float32),
                        preferred_element_type=jnp.float32)
        y = y + b
        h = jnp.maximum(y, NEG_SLOPE * y)            # LeakyReLU, f32
    o_ref[...] = h.astype(o_ref.dtype)


# ----------------------------------------------------------------------------
# Parameter construction / packing
# ----------------------------------------------------------------------------
def init_lobster_encoder_params(key, in_channel, out_channel, layer_num,
                                dtype=jnp.float32):
    """Synthetic params matching nn.Linear: W stored as (d_in, d_out), b (d_out,)."""
    sizes = cal_size_list(in_channel, out_channel, layer_num)
    params = []
    for ln in range(len(sizes) - 1):
        d_in, d_out = int(sizes[ln]), int(sizes[ln + 1])
        key, kw, kb = jax.random.split(key, 3)
        bound = 1.0 / np.sqrt(d_in)                  # PyTorch default init range
        w = jax.random.uniform(kw, (d_in, d_out), dtype, -bound, bound)
        b = jax.random.uniform(kb, (d_out,), dtype, -bound, bound)
        params.append((w, b))
    return params


def pack_params(params, dtype=jnp.float32):
    """Per-layer zero-pad to (rup(d_in,128), rup(d_out,128)); pad bias lanes = 0."""
    packed = []
    for w, b in params:
        d_in, d_out = w.shape
        di, do = _round_up(d_in, LANE), _round_up(d_out, LANE)
        wp = np.zeros((di, do), np.float32)
        wp[:d_in, :d_out] = np.asarray(w, np.float32)
        bp = np.zeros((1, do), np.float32)
        bp[0, :d_out] = np.asarray(b, np.float32)
        packed.append((jnp.asarray(wp, dtype), jnp.asarray(bp, dtype)))
    return packed


# ----------------------------------------------------------------------------
# Fused forward pass
# ----------------------------------------------------------------------------
def _pick_tb(batch):
    cap = 256                                     # f32 h tile stays at ~32 vregs
    min_steps = 2 if batch > SUBLANE else 1       # keep both v7x TCs busy
    nsteps = max(pl.cdiv(batch, cap), min_steps)
    return max(SUBLANE, _round_up(pl.cdiv(batch, nsteps), SUBLANE))


@functools.partial(jax.jit, static_argnames=("out_channel", "tb", "use_bf16",
                                             "single_buffer_weights"))
def lobster_encoder_forward(x, packed_params, out_channel, tb=None,
                            use_bf16=False, single_buffer_weights=True):
    batch, d_in = x.shape
    num_layers = len(packed_params)
    d_in_pad = packed_params[0][0].shape[0]
    out_pad = packed_params[-1][0].shape[1]
    assert d_in_pad == _round_up(d_in, LANE)

    if tb is None:
        tb = _pick_tb(batch)
    tb = max(SUBLANE, _round_up(tb, SUBLANE))

    # Lane-pad x only when needed (pad lanes are 0; padded weight rows are 0).
    x_p = x if d_in == d_in_pad else jnp.pad(x, ((0, 0), (0, d_in_pad - d_in)))

    grid = (pl.cdiv(batch, tb),)                  # ragged last tile masked by Pallas

    weight_mode = pl.Buffered(1) if single_buffer_weights else None
    in_specs = [pl.BlockSpec((tb, d_in_pad), lambda i: (i, 0))]
    operands = [x_p]
    for w, b in packed_params:
        in_specs.append(pl.BlockSpec(w.shape, lambda i: (0, 0),
                                     pipeline_mode=weight_mode))
        in_specs.append(pl.BlockSpec(b.shape, lambda i: (0, 0),
                                     pipeline_mode=weight_mode))
        operands.extend((w, b))

    # Static VMEM / cost budgets.
    itemsize = np.dtype(x.dtype).itemsize
    wb_bytes = sum(int(w.size + b.size) * np.dtype(w.dtype).itemsize
                   for w, b in packed_params)
    max_pad = max([d_in_pad] + [int(w.shape[1]) for w, _ in packed_params])
    need = ((1 if single_buffer_weights else 2) * wb_bytes
            + 2 * tb * d_in_pad * itemsize        # double-buffered x tiles
            + 2 * tb * out_pad * itemsize         # double-buffered out tiles
            + 3 * tb * max_pad * 4)               # f32 activation temporaries
    vmem_limit = int(min(max(2 * need, 32 * 1024 * 1024), 64 * 1024 * 1024))

    flops = 2 * batch * sum(int(w.shape[0]) * int(w.shape[1])
                            for w, _ in packed_params)
    bytes_accessed = (batch * d_in_pad * itemsize + wb_bytes
                      + batch * out_pad * itemsize)

    out = pl.pallas_call(
        functools.partial(_mlp_kernel, num_layers=num_layers, use_bf16=use_bf16),
        out_shape=jax.ShapeDtypeStruct((batch, out_pad), x.dtype),
        grid=grid,
        in_specs=in_specs,
        out_specs=pl.BlockSpec((tb, out_pad), lambda i: (i, 0)),
        compiler_params=pltpu.CompilerParams(
            dimension_semantics=("parallel",),
            vmem_limit_bytes=vmem_limit),
        cost_estimate=pl.CostEstimate(flops=flops, transcendentals=0,
                                      bytes_accessed=bytes_accessed),
    )(*operands)
    return out[:, :out_channel]


# ----------------------------------------------------------------------------
# Pure-JAX reference
# ----------------------------------------------------------------------------
def _reference_forward(x, params):
    h = x.astype(jnp.float32)
    for w, b in params:
        y = h @ w.astype(jnp.float32) + b.astype(jnp.float32)
        h = jnp.where(y > 0, y, NEG_SLOPE * y)
    return h


if __name__ == "__main__":
    in_channel, out_channel, layer_num = 32, 8, 2
    batch = 24          # tb=8 -> 3-step parallel grid, all tiles full

    key = jax.random.PRNGKey(0)
    kx, kp = jax.random.split(key)
    x = jax.random.normal(kx, (batch, in_channel), dtype=jnp.float32)
    params = init_lobster_encoder_params(kp, in_channel, out_channel, layer_num)
    packed = pack_params(params)

    try:
        out = lobster_encoder_forward(x, packed, out_channel=out_channel, tb=8)
    except Exception:
        # Fallback: retry with default double-buffered weight specs if this
        # jax build rejects pipeline_mode=pl.Buffered(1).
        out = lobster_encoder_forward(x, packed, out_channel=out_channel, tb=8,
                                      single_buffer_weights=False)
    out = jax.block_until_ready(out)

    ref = _reference_forward(x, params)
    np.testing.assert_allclose(np.asarray(out), np.asarray(ref),
                               rtol=1e-5, atol=1e-5)

    print("KERNEL_OK")
</pallas_src>

<mosaic_0001>
module attributes {stable_mosaic.version = 11 : i64} {
  func.func @_mlp_kernel(%arg0: i32, %arg1: memref<8x128xf32, #tpu.memory_space<vmem>>, %arg2: memref<128x128xf32, #tpu.memory_space<vmem>>, %arg3: memref<1x128xf32, #tpu.memory_space<vmem>>, %arg4: memref<128x128xf32, #tpu.memory_space<vmem>>, %arg5: memref<1x128xf32, #tpu.memory_space<vmem>>, %arg6: memref<8x128xf32, #tpu.memory_space<vmem>>) attributes {dimension_semantics = [#tpu.dimension_semantics<parallel>], iteration_bounds = array<i64: 3>, scalar_prefetch = 0 : i64, scratch_operands = 0 : i64, tpu.core_type = #tpu.core_type<tc>, window_params = [{transform_indices = @transform_0, window_bounds = array<i64: 8, 128>}, {pipeline_mode = #tpu.pipeline_mode<synchronous>, transform_indices = @transform_1, window_bounds = array<i64: 128, 128>}, {pipeline_mode = #tpu.pipeline_mode<synchronous>, transform_indices = @transform_2, window_bounds = array<i64: 1, 128>}, {pipeline_mode = #tpu.pipeline_mode<synchronous>, transform_indices = @transform_3, window_bounds = array<i64: 128, 128>}, {pipeline_mode = #tpu.pipeline_mode<synchronous>, transform_indices = @transform_4, window_bounds = array<i64: 1, 128>}, {transform_indices = @transform_5, window_bounds = array<i64: 8, 128>}]} {
    %c0 = arith.constant 0 : index
    %c0_0 = arith.constant 0 : index
    %0 = vector.load %arg1[%c0, %c0_0] : memref<8x128xf32, #tpu.memory_space<vmem>>, vector<8x128xf32>
    %c0_1 = arith.constant 0 : index
    %c0_2 = arith.constant 0 : index
    %1 = vector.load %arg2[%c0_1, %c0_2] : memref<128x128xf32, #tpu.memory_space<vmem>>, vector<128x128xf32>
    %c0_3 = arith.constant 0 : index
    %c0_4 = arith.constant 0 : index
    %2 = vector.load %arg3[%c0_3, %c0_4] : memref<1x128xf32, #tpu.memory_space<vmem>>, vector<1x128xf32>
    %cst = arith.constant dense<0.000000e+00> : vector<8x128xf32>
    %3 = tpu.matmul %0, %1, %cst {dimension_numbers = #tpu.dot_dimension_numbers<[1], [0], [0], [1], [0, 0, 1, 1], [], []>} : vector<8x128xf32>, vector<128x128xf32>, vector<8x128xf32> -> vector<8x128xf32>
    %4 = vector.broadcast %2 : vector<1x128xf32> to vector<8x128xf32>
    %5 = arith.addf %3, %4 : vector<8x128xf32>
    %cst_5 = arith.constant 0.00999999977 : f32
    %6 = vector.broadcast %cst_5 : f32 to vector<8x128xf32>
    %7 = arith.mulf %6, %5 : vector<8x128xf32>
    %8 = arith.maximumf %5, %7 : vector<8x128xf32>
    %c0_6 = arith.constant 0 : index
    %c0_7 = arith.constant 0 : index
    %9 = vector.load %arg4[%c0_6, %c0_7] : memref<128x128xf32, #tpu.memory_space<vmem>>, vector<128x128xf32>
    %c0_8 = arith.constant 0 : index
    %c0_9 = arith.constant 0 : index
    %10 = vector.load %arg5[%c0_8, %c0_9] : memref<1x128xf32, #tpu.memory_space<vmem>>, vector<1x128xf32>
    %cst_10 = arith.constant dense<0.000000e+00> : vector<8x128xf32>
    %11 = tpu.matmul %8, %9, %cst_10 {dimension_numbers = #tpu.dot_dimension_numbers<[1], [0], [0], [1], [0, 0, 1, 1], [], []>} : vector<8x128xf32>, vector<128x128xf32>, vector<8x128xf32> -> vector<8x128xf32>
    %12 = vector.broadcast %10 : vector<1x128xf32> to vector<8x128xf32>
    %13 = arith.addf %11, %12 : vector<8x128xf32>
    %cst_11 = arith.constant 0.00999999977 : f32
    %14 = vector.broadcast %cst_11 : f32 to vector<8x128xf32>
    %15 = arith.mulf %14, %13 : vector<8x128xf32>
    %16 = arith.maximumf %13, %15 : vector<8x128xf32>
    %c0_12 = arith.constant 0 : index
    %c0_13 = arith.constant 0 : index
    %17 = vector.load %arg6[%c0_12, %c0_13] : memref<8x128xf32, #tpu.memory_space<vmem>>, vector<8x128xf32>
    tpu.vector_store %arg6[%c0_12, %c0_13], %16 {strides = array<i32>} : memref<8x128xf32, #tpu.memory_space<vmem>>, vector<8x128xf32>,
    return
  }
  func.func @transform_0(%arg0: i32) -> (i32, i32) {
    %c0_i32 = arith.constant 0 : i32
    %c0_i32_0 = arith.constant 0 : i32
    return %arg0, %c0_i32 : i32, i32
  }
  func.func @transform_1(%arg0: i32) -> (i32, i32) {
    %c0_i32 = arith.constant 0 : i32
    %c0_i32_0 = arith.constant 0 : i32
    %c0_i32_1 = arith.constant 0 : i32
    return %c0_i32, %c0_i32_0 : i32, i32
  }
  func.func @transform_2(%arg0: i32) -> (i32, i32) {
    %c0_i32 = arith.constant 0 : i32
    %c0_i32_0 = arith.constant 0 : i32
    %c0_i32_1 = arith.constant 0 : i32
    return %c0_i32, %c0_i32_0 : i32, i32
  }
  func.func @transform_3(%arg0: i32) -> (i32, i32) {
    %c0_i32 = arith.constant 0 : i32
    %c0_i32_0 = arith.constant 0 : i32
    %c0_i32_1 = arith.constant 0 : i32
    return %c0_i32, %c0_i32_0 : i32, i32
  }
  func.func @transform_4(%arg0: i32) -> (i32, i32) {
    %c0_i32 = arith.constant 0 : i32
    %c0_i32_0 = arith.constant 0 : i32
    %c0_i32_1 = arith.constant 0 : i32
    return %c0_i32, %c0_i32_0 : i32, i32
  }
  func.func @transform_5(%arg0: i32) -> (i32, i32) {
    %c0_i32 = arith.constant 0 : i32
    %c0_i32_0 = arith.constant 0 : i32
    return %arg0, %c0_i32 : i32, i32
  }
}

module attributes {stable_mosaic.version = 11 : i64} {
  func.func @_mlp_kernel(%arg0: i32, %arg1: memref<8x128xf32, #tpu.memory_space<vmem>>, %arg2: memref<128x128xf32, #tpu.memory_space<vmem>>, %arg3: memref<1x128xf32, #tpu.memory_space<vmem>>, %arg4: memref<128x128xf32, #tpu.memory_space<vmem>>, %arg5: memref<1x128xf32, #tpu.memory_space<vmem>>, %arg6: memref<8x128xf32, #tpu.memory_space<vmem>>) attributes {dimension_semantics = [#tpu.dimension_semantics<parallel>], iteration_bounds = array<i64: 3>, scalar_prefetch = 0 : i64, scratch_operands = 0 : i64, tpu.core_type = #tpu.core_type<tc>, window_params = [{transform_indices = @transform_0, window_bounds = array<i64: 8, 128>}, {pipeline_mode = #tpu.pipeline_mode<synchronous>, transform_indices = @transform_1, window_bounds = array<i64: 128, 128>}, {pipeline_mode = #tpu.pipeline_mode<synchronous>, transform_indices = @transform_2, window_bounds = array<i64: 1, 128>}, {pipeline_mode = #tpu.pipeline_mode<synchronous>, transform_indices = @transform_3, window_bounds = array<i64: 128, 128>}, {pipeline_mode = #tpu.pipeline_mode<synchronous>, transform_indices = @transform_4, window_bounds = array<i64: 1, 128>}, {transform_indices = @transform_5, window_bounds = array<i64: 8, 128>}]} {
    %c0 = arith.constant 0 : index
    %c0_0 = arith.constant 0 : index
    %0 = vector.load %arg1[%c0, %c0_0] : memref<8x128xf32, #tpu.memory_space<vmem>>, vector<8x128xf32>
    %c0_1 = arith.constant 0 : index
    %c0_2 = arith.constant 0 : index
    %1 = vector.load %arg2[%c0_1, %c0_2] : memref<128x128xf32, #tpu.memory_space<vmem>>, vector<128x128xf32>
    %c0_3 = arith.constant 0 : index
    %c0_4 = arith.constant 0 : index
    %2 = vector.load %arg3[%c0_3, %c0_4] : memref<1x128xf32, #tpu.memory_space<vmem>>, vector<1x128xf32>
    %cst = arith.constant dense<0.000000e+00> : vector<8x128xf32>
    %3 = tpu.matmul %0, %1, %cst {dimension_numbers = #tpu.dot_dimension_numbers<[1], [0], [0], [1], [0, 0, 1, 1], [], []>} : vector<8x128xf32>, vector<128x128xf32>, vector<8x128xf32> -> vector<8x128xf32>
    %4 = vector.broadcast %2 : vector<1x128xf32> to vector<8x128xf32>
    %5 = arith.addf %3, %4 : vector<8x128xf32>
    %cst_5 = arith.constant 0.00999999977 : f32
    %6 = vector.broadcast %cst_5 : f32 to vector<8x128xf32>
    %7 = arith.mulf %6, %5 : vector<8x128xf32>
    %8 = arith.maximumf %5, %7 : vector<8x128xf32>
    %c0_6 = arith.constant 0 : index
    %c0_7 = arith.constant 0 : index
    %9 = vector.load %arg4[%c0_6, %c0_7] : memref<128x128xf32, #tpu.memory_space<vmem>>, vector<128x128xf32>
    %c0_8 = arith.constant 0 : index
    %c0_9 = arith.constant 0 : index
    %10 = vector.load %arg5[%c0_8, %c0_9] : memref<1x128xf32, #tpu.memory_space<vmem>>, vector<1x128xf32>
    %cst_10 = arith.constant dense<0.000000e+00> : vector<8x128xf32>
    %11 = tpu.matmul %8, %9, %cst_10 {dimension_numbers = #tpu.dot_dimension_numbers<[1], [0], [0], [1], [0, 0, 1, 1], [], []>} : vector<8x128xf32>, vector<128x128xf32>, vector<8x128xf32> -> vector<8x128xf32>
    %12 = vector.broadcast %10 : vector<1x128xf32> to vector<8x128xf32>
    %13 = arith.addf %11, %12 : vector<8x128xf32>
    %cst_11 = arith.constant 0.00999999977 : f32
    %14 = vector.broadcast %cst_11 : f32 to vector<8x128xf32>
    %15 = arith.mulf %14, %13 : vector<8x128xf32>
    %16 = arith.maximumf %13, %15 : vector<8x128xf32>
    %c0_12 = arith.constant 0 : index
    %c0_13 = arith.constant 0 : index
    %17 = vector.load %arg6[%c0_12, %c0_13] : memref<8x128xf32, #tpu.memory_space<vmem>>, vector<8x128xf32>
    tpu.vector_store %arg6[%c0_12, %c0_13], %16 {strides = array<i32>} : memref<8x128xf32, #tpu.memory_space<vmem>>, vector<8x128xf32>,
    return
  }
  func.func @transform_0(%arg0: i32) -> (i32, i32) {
    %c0_i32 = arith.constant 0 : i32
    %c0_i32_0 = arith.constant 0 : i32
    return %arg0, %c0_i32 : i32, i32
  }
  func.func @transform_1(%arg0: i32) -> (i32, i32) {
    %c0_i32 = arith.constant 0 : i32
    %c0_i32_0 = arith.constant 0 : i32
    %c0_i32_1 = arith.constant 0 : i32
    return %c0_i32, %c0_i32_0 : i32, i32
  }
  func.func @transform_2(%arg0: i32) -> (i32, i32) {
    %c0_i32 = arith.constant 0 : i32
    %c0_i32_0 = arith.constant 0 : i32
    %c0_i32_1 = arith.constant 0 : i32
    return %c0_i32, %c0_i32_0 : i32, i32
  }
  func.func @transform_3(%arg0: i32) -> (i32, i32) {
    %c0_i32 = arith.constant 0 : i32
    %c0_i32_0 = arith.constant 0 : i32
    %c0_i32_1 = arith.constant 0 : i32
    return %c0_i32, %c0_i32_0 : i32, i32
  }
  func.func @transform_4(%arg0: i32) -> (i32, i32) {
    %c0_i32 = arith.constant 0 : i32
    %c0_i32_0 = arith.constant 0 : i32
    %c0_i32_1 = arith.constant 0 : i32
    return %c0_i32, %c0_i32_0 : i32, i32
  }
  func.func @transform_5(%arg0: i32) -> (i32, i32) {
    %c0_i32 = arith.constant 0 : i32
    %c0_i32_0 = arith.constant 0 : i32
    return %arg0, %c0_i32 : i32, i32
  }
}

</mosaic_0001>

<bundles_post_ra>
// kernel: lobster_encoder_forward.1
= control target key start
LH: loop header
LB: loop body
LE: loop exit
PB: predicated region body
PF: predicated region fallthrough
CT: control target
= control target key end

     0   :  { %10 = vsyncpa [#allocation3], 0  ;;  %s949_s0 = inlined_call_operand.vmem [shape: f32[24,128], index: 0, kind: input, shape index: {}]   ;;  %s950_s1 = inlined_call_operand.hbm [shape: f32[128,128], index: 1, kind: input, shape index: {}]   ;;  %s951_s2 = inlined_call_operand.vmem [shape: f32[1,128], index: 2, kind: input, shape index: {}]   ;;  %s952_s3 = inlined_call_operand.hbm [shape: f32[128,128], index: 3, kind: input, shape index: {}]   ;;  %s953_s4 = inlined_call_operand.vmem [shape: f32[1,128], index: 4, kind: input, shape index: {}]   ;;  %s954_s5 = inlined_call_operand.vmem [shape: f32[24,128], index: 5, kind: output, shape index: {}]  }
   0x1   :  { %11 = vsyncpa [#allocation5], 0  ;;  %s827_s18 = smov 0  }
   0x2 LB: > { %s833_s19 = sadd.s32 4294967295, %s788_s18   ;;  %p519_p0 = scmp.ge.s32.totalorder %s788_s18, 1  ;;  %s788_s18 = sphi %s827_s18, %s17_s18  }
   0x3   : > { %p158_p1 = scmp.lt.s32.totalorder %s788_s18, 4  ;;  %s790_s20 = smov [#allocation2]  }
   0x4   : > { %s170_s21 = sshll.u32 %s790_s20, 4  ;;  %p955_p3 = scmp.eq.s32.totalorder %s833_s19, 0  ;;  %s171_s21 = int_to_ptr.vmem [resolvable:$true] %s170_s21 }
   0x5   : > { %p837_p2 = pnand %p519_p0, %p158_p1  ;;  %s791_s23 = smov [#allocation4]  }
   0x6   : > { %s186_s24 = sshll.u32 %s791_s23, 4  ;;  %s718_s28 = scalar_lea.hbm %s950_s1, 2048  ;;  %s850_s24 = int_to_ptr.vmem [resolvable:$true] %s186_s24 }
   0x7   : > { %s957_s22 = scalar_select %p837_p2, 1, 0 }
   0x8   : > { %p692_p4 = pneg %p837_p2  ;;  %p719_p6 = scmp.ne.s32.totalorder %s950_s1, %s718_s28 }
   0x9   : > { %p725_p10 = scmp.lt.u32.totalorder %s718_s28, %s950_s1 }
   0xa   : > { %p846_p5 = pnand %p955_p3, %p692_p4 }
   0xc   : > { %p720_p7 = pneg %p846_p5 }
   0xe   : > { %p721_p8 = pnand %p720_p7, %p719_p6 }
  0x10   : > { %p722_p9 = pneg %p721_p8 }
  0x12   : > { %p727_p11 = pnand %p725_p10, %p722_p9 }
  0x14   : > { %730 = shalt.err (!%p727_p11)
}
  0x15   : > { %s731_s8 = scalar_lea.vmem %s171_s21, 2048  ;;  %p739_p1 = scmp.lt.s32.totalorder %s171_s21, %s171_s21 }
  0x16   : > { %p732_p12 = scmp.ne.s32.totalorder %s171_s21, %s731_s8  ;;  %p740_p4 = scmp.lt.s32.totalorder %s731_s8, %s731_s8 }
  0x18   : > { %p734_p13 = pnand %p732_p12, %p720_p7  ;;  %p741_p3 = por %p740_p4, %p739_p1 }
  0x1a   : > { %p735_p0 = pneg %p734_p13 }
  0x1c   : > { %p742_p2 = pnand %p741_p3, %p735_p0 }
  0x1e   : > { %745 = shalt.err (!%p742_p2)
}
  0x1f   : > { %s792_s9 = smov 128   ;;  %s793_s10 = smov 8  }
  0x20   : > { %695 = dma.hbm_to_vmem [thread:$0]  (!%p846_p5), %s950_s1, 2048, %s171_s21, [#allocation3], %s792_s9, %s792_s9, %s793_s10  }
  0x21   : > { %s746_s15 = scalar_lea.hbm %s952_s3, 2048 }
  0x22   : > { %p747_p6 = scmp.ne.s32.totalorder %s952_s3, %s746_s15  ;;  %p753_p8 = scmp.lt.u32.totalorder %s746_s15, %s952_s3 }
  0x24   : > { %p749_p2 = pnand %p747_p6, %p720_p7 }
  0x26   : > { %p750_p3 = pneg %p749_p2 }
  0x28   : > { %p755_p9 = pnand %p753_p8, %p750_p3 }
  0x2a   : > { %758 = shalt.err (!%p755_p9)
}
  0x2b   : > { %s759_s21 = scalar_lea.vmem %s850_s24, 2048  ;;  %p767_p13 = scmp.lt.s32.totalorder %s850_s24, %s850_s24 }
  0x2c   : > { %p760_p10 = scmp.ne.s32.totalorder %s850_s24, %s759_s21  ;;  %p768_p0 = scmp.lt.s32.totalorder %s759_s21, %s759_s21 }
  0x2e   : > { %p762_p11 = pnand %p760_p10, %p720_p7  ;;  %p769_p1 = por %p768_p0, %p767_p13 }
  0x30   : > { %p763_p12 = pneg %p762_p11 }
  0x32   : > { %p770_p4 = pnand %p769_p1, %p763_p12 }
  0x34   : > { %773 = shalt.err (!%p770_p4)
}
  0x35   : > { %698 = dma.hbm_to_vmem [thread:$0]  (!%p846_p5), %s952_s3, 2048, %s850_s24, [#allocation5], %s792_s9, %s792_s9, %s793_s10  }
  0x36   : > { %p959_p6 = scmp.ne.s32.totalorder %s957_s22, 0 }
  0x37   : > { %p960_p2 = scmp.eq.s32.totalorder (!%p959_p6), %s833_s19, 0 }
  0x38   : > { %212 = sbr.rel (%p959_p6) target bundleno = 538 (0x21a), region = 40 }
  0x3f   : > { %779 = dma.done.wait (%p960_p2), [#allocation3], 2048   ;;  %p961_p7 = pmov %p960_p2 }
  0x40   : > { %p962_p3 = pmov %p960_p2 }
  0x41   : > { %781 = vsyncadd (%p961_p7), [#allocation3], 4294965248 }
  0x42   : > { %783 = dma.done.wait (%p962_p3), [#allocation5], 2048   ;;  %p963_p8 = pmov %p960_p2 }
  0x43   : > { %v794_v0 = vmov 0.0|0.0   ;;  %vm795_vm0 = vmmov 0   ;;  %v796_v1 = vmov 0.0   ;;  %v251_v2 = vld [vmem:[#allocation2] sm:$0xff]  ;;  %v252_v3 = vld [vmem:[#allocation2 + $0x8] sm:$0xff]  ;;  %v253_v4 = vld [vmem:[#allocation2 + $0x10] sm:$0xff] }
  0x44   : > { %785 = vsyncadd (%p963_p8), [#allocation5], 4294965248  ;;  %636 = vmatprep.subr.bf16.mxu0 %v794_v0  ;;  %598 = vmatprep.mubr.msk.f32.mxu0 %vm795_vm0, %v796_v1  ;;  %v637_v5 = vpack.c.bf16 %v252_v3, %v251_v2  ;;  %v254_v6 = vld [vmem:[#allocation2 + $0x18] sm:$0xff]  ;;  %v255_v8 = vld [vmem:[#allocation2 + $0x20] sm:$0xff]  ;;  %p242_p5 = scmp.lt.s32.totalorder %s833_s19, 2 }
  0x45   : > { %660 = vmatprep.subr.bf16.mxu1 %v794_v0  ;;  %633 = vmatprep.mubr.msk.f32.mxu1 %vm795_vm0, %v796_v1  ;;  %v640_v7 = vpack.c.bf16 %v254_v6, %v253_v4  ;;  %v256_v9 = vld [vmem:[#allocation2 + $0x28] sm:$0xff]  ;;  %v346_v10 = vld [vmem:[#allocation4] sm:$0xff]  ;;  %v348_v12 = vld [vmem:[#allocation4 + $0x10] sm:$0xff] }
  0x46   : > { %638 = vmatpush3.bf16.msra.mxu0 %v637_v5  ;;  %v347_v11 = vld [vmem:[#allocation4 + $0x8] sm:$0xff]  ;;  %v349_v13 = vld [vmem:[#allocation4 + $0x18] sm:$0xff]  ;;  %v643_v14 = vpack.c.bf16 %v256_v9, %v255_v8  ;;  %v257_v16 = vld [vmem:[#allocation2 + $0x30] sm:$0xff]  ;;  %s965_s19 = smov (!%p242_p5, %s833_s19), 2 }
  0x47   : > { %639 = vmatprep.subr.bf16.mxu0 %v794_v0  ;;  %v661_v15 = vpack.c.bf16 %v347_v11, %v346_v10  ;;  %v258_v17 = vld [vmem:[#allocation2 + $0x38] sm:$0xff]  ;;  %v664_v18 = vpack.c.bf16 %v349_v13, %v348_v12  ;;  %v350_v19 = vld [vmem:[#allocation4 + $0x20] sm:$0xff]  ;;  %v351_v20 = vld [vmem:[#allocation4 + $0x28] sm:$0xff]  ;;  %s526_s22 = sshll.u32 %s965_s19, 3 }
  0x48   : > { %v646_v21 = vpack.c.bf16 %v258_v17, %v257_v16  ;;  %v259_v22 = vld [vmem:[#allocation2 + $0x40] sm:$0xff]  ;;  %v260_v23 = vld [vmem:[#allocation2 + $0x48] sm:$0xff]  ;;  %v667_v24 = vpack.c.bf16 %v351_v20, %v350_v19  ;;  %v352_v25 = vld [vmem:[#allocation4 + $0x30] sm:$0xff]  ;;  %s245_s28 = scalar_lea.vmem %s949_s0, %s526_s22  ;;  %s249_s10 = scalar_lea.vmem %s954_s5, %s526_s22 }
  0x49   : > { %662 = vmatpush3.bf16.msra.mxu1 %v661_v15  ;;  %v353_v26 = vld [vmem:[#allocation4 + $0x38] sm:$0xff]  ;;  %v649_v27 = vpack.c.bf16 %v260_v23, %v259_v22  ;;  %v261_v28 = vld [vmem:[#allocation2 + $0x50] sm:$0xff]  ;;  %v354_v31 = vld [vmem:[#allocation4 + $0x40] sm:$0xff] }
  0x4a   : > { %641 = vmatpush3.bf16.msra.mxu0 %v640_v7  ;;  %663 = vmatprep.subr.bf16.mxu1 %v794_v0  ;;  %v262_v29 = vld [vmem:[#allocation2 + $0x58] sm:$0xff]  ;;  %v670_v30 = vpack.c.bf16 %v353_v26, %v352_v25  ;;  %v355_v32 = vld [vmem:[#allocation4 + $0x48] sm:$0xff]  ;;  %v263_v34 = vld [vmem:[#allocation2 + $0x60] sm:$0xff] }
  0x4b   : > { %642 = vmatprep.subr.bf16.mxu0 %v794_v0  ;;  %v652_v33 = vpack.c.bf16 %v262_v29, %v261_v28  ;;  %v264_v35 = vld [vmem:[#allocation2 + $0x68] sm:$0xff]  ;;  %v673_v36 = vpack.c.bf16 %v355_v32, %v354_v31  ;;  %v356_v37 = vld [vmem:[#allocation4 + $0x50] sm:$0xff]  ;;  %v357_v38 = vld [vmem:[#allocation4 + $0x58] sm:$0xff] }
  0x4c   : > { %v655_v39 = vpack.c.bf16 %v264_v35, %v263_v34  ;;  %v265_v40 = vld [vmem:[#allocation2 + $0x70] sm:$0xff]  ;;  %v266_v41 = vld [vmem:[#allocation2 + $0x78] sm:$0xff]  ;;  %v676_v42 = vpack.c.bf16 %v357_v38, %v356_v37  ;;  %v250_v44 = vld [vmem:[%s245_s28] sm:$0xff] }
  0x4d   : > { %665 = vmatpush3.bf16.msra.mxu1 %v664_v18  ;;  %v658_v43 = vpack.c.bf16 %v266_v41, %v265_v40  ;;  %v358_v45 = vld [vmem:[#allocation4 + $0x60] sm:$0xff]  ;;  %v359_v46 = vld [vmem:[#allocation4 + $0x68] sm:$0xff]  ;;  %v360_v48 = vld [vmem:[#allocation4 + $0x70] sm:$0xff] }
  0x4e   : > { %644 = vmatpush3.bf16.msra.mxu0 %v643_v14  ;;  %666 = vmatprep.subr.bf16.mxu1 %v794_v0  ;;  %v679_v47 = vpack.c.bf16 %v359_v46, %v358_v45  ;;  %v361_v49 = vld [vmem:[#allocation4 + $0x78] sm:$0xff]  ;;  %v528_v51 = vld [vmem:[%s951_s2] ss:$0 sm:$0xff] }
  0x4f   : > { %645 = vmatprep.subr.bf16.mxu0 %v794_v0  ;;  %v682_v50 = vpack.c.bf16 %v361_v49, %v360_v48  ;;  %v529_v57 = vld [vmem:[%s953_s4] ss:$0 sm:$0xff] }
  0x51   : > { %668 = vmatpush3.bf16.msra.mxu1 %v667_v24 }
  0x52   : > { %647 = vmatpush3.bf16.msra.mxu0 %v646_v21  ;;  %669 = vmatprep.subr.bf16.mxu1 %v794_v0 }
  0x53   : > { %648 = vmatprep.subr.bf16.mxu0 %v794_v0 }
  0x55   : > { %671 = vmatpush3.bf16.msra.mxu1 %v670_v30 }
  0x56   : > { %650 = vmatpush3.bf16.msra.mxu0 %v649_v27  ;;  %672 = vmatprep.subr.bf16.mxu1 %v794_v0 }
  0x57   : > { %651 = vmatprep.subr.bf16.mxu0 %v794_v0 }
  0x59   : > { %674 = vmatpush3.bf16.msra.mxu1 %v673_v36 }
  0x5a   : > { %653 = vmatpush3.bf16.msra.mxu0 %v652_v33  ;;  %675 = vmatprep.subr.bf16.mxu1 %v794_v0 }
  0x5b   : > { %654 = vmatprep.subr.bf16.mxu0 %v794_v0 }
  0x5d   : > { %677 = vmatpush3.bf16.msra.mxu1 %v676_v42 }
  0x5e   : > { %656 = vmatpush3.bf16.msra.mxu0 %v655_v39  ;;  %678 = vmatprep.subr.bf16.mxu1 %v794_v0 }
  0x5f   : > { %657 = vmatprep.subr.bf16.mxu0 %v794_v0 }
  0x61   : > { %680 = vmatpush3.bf16.msra.mxu1 %v679_v47 }
  0x62   : > { %659 = vmatpush3.bf16.msra.mxu0 %v658_v43  ;;  %681 = vmatprep.subr.bf16.mxu1 %v794_v0 }
  0x65   : > { %599 = vmatmul.mubr.f32.vlgmr.msra.gmra.mrb[0].mxu0 %v250_v44  ;;  %683 = vmatpush3.bf16.msra.mxu1 %v682_v50 }
 0x138   : > { %v340_v52 = vpop.f32.mrb[0].mxu0 }
 0x139   : > { %v341_v53 = vadd.f32 %v528_v51, %v340_v52  ;;  %v600_v54 = vpop.f32.mrb[1].mxu0 }
 0x13b   : > { %v344_v55 = vmul.f32 0.01, %v341_v53 }
 0x13d   : > { %v345_v56 = vmax.f32 %v341_v53, %v344_v55 }
 0x13f   : > { %634 = vmatmul.mubr.f32.vlgmr.msra.gmra.mrb[0].mxu1 %v345_v56 }
 0x212   : > { %v435_v58 = vpop.f32.mrb[0].mxu1 }
 0x213   : > { %v436_v59 = vadd.f32 %v529_v57, %v435_v58  ;;  %v635_v60 = vpop.f32.mrb[1].mxu1 }
 0x215   : > { %v439_v61 = vmul.f32 0.01, %v436_v59 }
 0x217   : > { %v440_v62 = vmax.f32 %v436_v59, %v439_v61 }
 0x219   : > { %441 = vst [vmem:[%s249_s10] sm:$0xff] %v440_v62 }
 0x21a PF: > { %s17_s18 = sadd.s32 1, %s788_s18  }
 0x21b   : > { %p14_p9 = scmp.ge.s32.totalorder %s17_s18, 5  }
 0x21d   :  { %16 = sbr.rel (!%p14_p9) target bundleno = 2 (0x2), region = 79 }
 0x224   :  { %461 = vsyncpa [#allocation3], 1 }
 0x225   :  { %463 = vsyncpa [#allocation3 + $0x1], 1 }
 0x226   :  { %464 = vsyncpa [#allocation5], 1 }

// kernel: lobster_encoder_forward.1
= control target key start
LH: loop header
LB: loop body
LE: loop exit
PB: predicated region body
PF: predicated region fallthrough
CT: control target
= control target key end

     0   :  { %10 = vsyncpa [#allocation3], 0  ;;  %s949_s0 = inlined_call_operand.vmem [shape: f32[24,128], index: 0, kind: input, shape index: {}]   ;;  %s950_s1 = inlined_call_operand.hbm [shape: f32[128,128], index: 1, kind: input, shape index: {}]   ;;  %s951_s2 = inlined_call_operand.vmem [shape: f32[1,128], index: 2, kind: input, shape index: {}]   ;;  %s952_s3 = inlined_call_operand.hbm [shape: f32[128,128], index: 3, kind: input, shape index: {}]   ;;  %s953_s4 = inlined_call_operand.vmem [shape: f32[1,128], index: 4, kind: input, shape index: {}]   ;;  %s954_s5 = inlined_call_operand.vmem [shape: f32[24,128], index: 5, kind: output, shape index: {}]  }
   0x1   :  { %11 = vsyncpa [#allocation5], 0  ;;  %s827_s18 = smov 0  }
   0x2 LB: > { %s833_s19 = sadd.s32 4294967295, %s788_s18   ;;  %p519_p0 = scmp.ge.s32.totalorder %s788_s18, 1  ;;  %s788_s18 = sphi %s827_s18, %s17_s18  }
   0x3   : > { %p158_p1 = scmp.lt.s32.totalorder %s788_s18, 4  ;;  %s790_s20 = smov [#allocation2]  }
   0x4   : > { %s170_s21 = sshll.u32 %s790_s20, 4  ;;  %p955_p3 = scmp.eq.s32.totalorder %s833_s19, 0  ;;  %s171_s21 = int_to_ptr.vmem [resolvable:$true] %s170_s21 }
   0x5   : > { %p837_p2 = pnand %p519_p0, %p158_p1  ;;  %s791_s23 = smov [#allocation4]  }
   0x6   : > { %s186_s24 = sshll.u32 %s791_s23, 4  ;;  %s718_s28 = scalar_lea.hbm %s950_s1, 2048  ;;  %s850_s24 = int_to_ptr.vmem [resolvable:$true] %s186_s24 }
   0x7   : > { %s957_s22 = scalar_select %p837_p2, 1, 0 }
   0x8   : > { %p692_p4 = pneg %p837_p2  ;;  %p719_p6 = scmp.ne.s32.totalorder %s950_s1, %s718_s28 }
   0x9   : > { %p725_p10 = scmp.lt.u32.totalorder %s718_s28, %s950_s1 }
   0xa   : > { %p846_p5 = pnand %p955_p3, %p692_p4 }
   0xc   : > { %p720_p7 = pneg %p846_p5 }
   0xe   : > { %p721_p8 = pnand %p720_p7, %p719_p6 }
  0x10   : > { %p722_p9 = pneg %p721_p8 }
  0x12   : > { %p727_p11 = pnand %p725_p10, %p722_p9 }
  0x14   : > { %730 = shalt.err (!%p727_p11)
}
  0x15   : > { %s731_s8 = scalar_lea.vmem %s171_s21, 2048  ;;  %p739_p1 = scmp.lt.s32.totalorder %s171_s21, %s171_s21 }
  0x16   : > { %p732_p12 = scmp.ne.s32.totalorder %s171_s21, %s731_s8  ;;  %p740_p4 = scmp.lt.s32.totalorder %s731_s8, %s731_s8 }
  0x18   : > { %p734_p13 = pnand %p732_p12, %p720_p7  ;;  %p741_p3 = por %p740_p4, %p739_p1 }
  0x1a   : > { %p735_p0 = pneg %p734_p13 }
  0x1c   : > { %p742_p2 = pnand %p741_p3, %p735_p0 }
  0x1e   : > { %745 = shalt.err (!%p742_p2)
}
  0x1f   : > { %s792_s9 = smov 128   ;;  %s793_s10 = smov 8  }
  0x20   : > { %695 = dma.hbm_to_vmem [thread:$0]  (!%p846_p5), %s950_s1, 2048, %s171_s21, [#allocation3], %s792_s9, %s792_s9, %s793_s10  }
  0x21   : > { %s746_s15 = scalar_lea.hbm %s952_s3, 2048 }
  0x22   : > { %p747_p6 = scmp.ne.s32.totalorder %s952_s3, %s746_s15  ;;  %p753_p8 = scmp.lt.u32.totalorder %s746_s15, %s952_s3 }
  0x24   : > { %p749_p2 = pnand %p747_p6, %p720_p7 }
  0x26   : > { %p750_p3 = pneg %p749_p2 }
  0x28   : > { %p755_p9 = pnand %p753_p8, %p750_p3 }
  0x2a   : > { %758 = shalt.err (!%p755_p9)
}
  0x2b   : > { %s759_s21 = scalar_lea.vmem %s850_s24, 2048  ;;  %p767_p13 = scmp.lt.s32.totalorder %s850_s24, %s850_s24 }
  0x2c   : > { %p760_p10 = scmp.ne.s32.totalorder %s850_s24, %s759_s21  ;;  %p768_p0 = scmp.lt.s32.totalorder %s759_s21, %s759_s21 }
  0x2e   : > { %p762_p11 = pnand %p760_p10, %p720_p7  ;;  %p769_p1 = por %p768_p0, %p767_p13 }
  0x30   : > { %p763_p12 = pneg %p762_p11 }
  0x32   : > { %p770_p4 = pnand %p769_p1, %p763_p12 }
  0x34   : > { %773 = shalt.err (!%p770_p4)
}
  0x35   : > { %698 = dma.hbm_to_vmem [thread:$0]  (!%p846_p5), %s952_s3, 2048, %s850_s24, [#allocation5], %s792_s9, %s792_s9, %s793_s10  }
  0x36   : > { %p959_p6 = scmp.ne.s32.totalorder %s957_s22, 0 }
  0x37   : > { %p960_p2 = scmp.eq.s32.totalorder (!%p959_p6), %s833_s19, 0 }
  0x38   : > { %212 = sbr.rel (%p959_p6) target bundleno = 538 (0x21a), region = 40 }
  0x3f   : > { %779 = dma.done.wait (%p960_p2), [#allocation3], 2048   ;;  %p961_p7 = pmov %p960_p2 }
  0x40   : > { %p962_p3 = pmov %p960_p2 }
  0x41   : > { %781 = vsyncadd (%p961_p7), [#allocation3], 4294965248 }
  0x42   : > { %783 = dma.done.wait (%p962_p3), [#allocation5], 2048   ;;  %p963_p8 = pmov %p960_p2 }
  0x43   : > { %v794_v0 = vmov 0.0|0.0   ;;  %vm795_vm0 = vmmov 0   ;;  %v796_v1 = vmov 0.0   ;;  %v251_v2 = vld [vmem:[#allocation2] sm:$0xff]  ;;  %v252_v3 = vld [vmem:[#allocation2 + $0x8] sm:$0xff]  ;;  %v253_v4 = vld [vmem:[#allocation2 + $0x10] sm:$0xff] }
  0x44   : > { %785 = vsyncadd (%p963_p8), [#allocation5], 4294965248  ;;  %636 = vmatprep.subr.bf16.mxu0 %v794_v0  ;;  %598 = vmatprep.mubr.msk.f32.mxu0 %vm795_vm0, %v796_v1  ;;  %v637_v5 = vpack.c.bf16 %v252_v3, %v251_v2  ;;  %v254_v6 = vld [vmem:[#allocation2 + $0x18] sm:$0xff]  ;;  %v255_v8 = vld [vmem:[#allocation2 + $0x20] sm:$0xff]  ;;  %p242_p5 = scmp.lt.s32.totalorder %s833_s19, 2 }
  0x45   : > { %660 = vmatprep.subr.bf16.mxu1 %v794_v0  ;;  %633 = vmatprep.mubr.msk.f32.mxu1 %vm795_vm0, %v796_v1  ;;  %v640_v7 = vpack.c.bf16 %v254_v6, %v253_v4  ;;  %v256_v9 = vld [vmem:[#allocation2 + $0x28] sm:$0xff]  ;;  %v346_v10 = vld [vmem:[#allocation4] sm:$0xff]  ;;  %v348_v12 = vld [vmem:[#allocation4 + $0x10] sm:$0xff] }
  0x46   : > { %638 = vmatpush3.bf16.msra.mxu0 %v637_v5  ;;  %v347_v11 = vld [vmem:[#allocation4 + $0x8] sm:$0xff]  ;;  %v349_v13 = vld [vmem:[#allocation4 + $0x18] sm:$0xff]  ;;  %v643_v14 = vpack.c.bf16 %v256_v9, %v255_v8  ;;  %v257_v16 = vld [vmem:[#allocation2 + $0x30] sm:$0xff]  ;;  %s965_s19 = smov (!%p242_p5, %s833_s19), 2 }
  0x47   : > { %639 = vmatprep.subr.bf16.mxu0 %v794_v0  ;;  %v661_v15 = vpack.c.bf16 %v347_v11, %v346_v10  ;;  %v258_v17 = vld [vmem:[#allocation2 + $0x38] sm:$0xff]  ;;  %v664_v18 = vpack.c.bf16 %v349_v13, %v348_v12  ;;  %v350_v19 = vld [vmem:[#allocation4 + $0x20] sm:$0xff]  ;;  %v351_v20 = vld [vmem:[#allocation4 + $0x28] sm:$0xff]  ;;  %s526_s22 = sshll.u32 %s965_s19, 3 }
  0x48   : > { %v646_v21 = vpack.c.bf16 %v258_v17, %v257_v16  ;;  %v259_v22 = vld [vmem:[#allocation2 + $0x40] sm:$0xff]  ;;  %v260_v23 = vld [vmem:[#allocation2 + $0x48] sm:$0xff]  ;;  %v667_v24 = vpack.c.bf16 %v351_v20, %v350_v19  ;;  %v352_v25 = vld [vmem:[#allocation4 + $0x30] sm:$0xff]  ;;  %s245_s28 = scalar_lea.vmem %s949_s0, %s526_s22  ;;  %s249_s10 = scalar_lea.vmem %s954_s5, %s526_s22 }
  0x49   : > { %662 = vmatpush3.bf16.msra.mxu1 %v661_v15  ;;  %v353_v26 = vld [vmem:[#allocation4 + $0x38] sm:$0xff]  ;;  %v649_v27 = vpack.c.bf16 %v260_v23, %v259_v22  ;;  %v261_v28 = vld [vmem:[#allocation2 + $0x50] sm:$0xff]  ;;  %v354_v31 = vld [vmem:[#allocation4 + $0x40] sm:$0xff] }
  0x4a   : > { %641 = vmatpush3.bf16.msra.mxu0 %v640_v7  ;;  %663 = vmatprep.subr.bf16.mxu1 %v794_v0  ;;  %v262_v29 = vld [vmem:[#allocation2 + $0x58] sm:$0xff]  ;;  %v670_v30 = vpack.c.bf16 %v353_v26, %v352_v25  ;;  %v355_v32 = vld [vmem:[#allocation4 + $0x48] sm:$0xff]  ;;  %v263_v34 = vld [vmem:[#allocation2 + $0x60] sm:$0xff] }
  0x4b   : > { %642 = vmatprep.subr.bf16.mxu0 %v794_v0  ;;  %v652_v33 = vpack.c.bf16 %v262_v29, %v261_v28  ;;  %v264_v35 = vld [vmem:[#allocation2 + $0x68] sm:$0xff]  ;;  %v673_v36 = vpack.c.bf16 %v355_v32, %v354_v31  ;;  %v356_v37 = vld [vmem:[#allocation4 + $0x50] sm:$0xff]  ;;  %v357_v38 = vld [vmem:[#allocation4 + $0x58] sm:$0xff] }
  0x4c   : > { %v655_v39 = vpack.c.bf16 %v264_v35, %v263_v34  ;;  %v265_v40 = vld [vmem:[#allocation2 + $0x70] sm:$0xff]  ;;  %v266_v41 = vld [vmem:[#allocation2 + $0x78] sm:$0xff]  ;;  %v676_v42 = vpack.c.bf16 %v357_v38, %v356_v37  ;;  %v250_v44 = vld [vmem:[%s245_s28] sm:$0xff] }
  0x4d   : > { %665 = vmatpush3.bf16.msra.mxu1 %v664_v18  ;;  %v658_v43 = vpack.c.bf16 %v266_v41, %v265_v40  ;;  %v358_v45 = vld [vmem:[#allocation4 + $0x60] sm:$0xff]  ;;  %v359_v46 = vld [vmem:[#allocation4 + $0x68] sm:$0xff]  ;;  %v360_v48 = vld [vmem:[#allocation4 + $0x70] sm:$0xff] }
  0x4e   : > { %644 = vmatpush3.bf16.msra.mxu0 %v643_v14  ;;  %666 = vmatprep.subr.bf16.mxu1 %v794_v0  ;;  %v679_v47 = vpack.c.bf16 %v359_v46, %v358_v45  ;;  %v361_v49 = vld [vmem:[#allocation4 + $0x78] sm:$0xff]  ;;  %v528_v51 = vld [vmem:[%s951_s2] ss:$0 sm:$0xff] }
  0x4f   : > { %645 = vmatprep.subr.bf16.mxu0 %v794_v0  ;;  %v682_v50 = vpack.c.bf16 %v361_v49, %v360_v48  ;;  %v529_v57 = vld [vmem:[%s953_s4] ss:$0 sm:$0xff] }
  0x51   : > { %668 = vmatpush3.bf16.msra.mxu1 %v667_v24 }
  0x52   : > { %647 = vmatpush3.bf16.msra.mxu0 %v646_v21  ;;  %669 = vmatprep.subr.bf16.mxu1 %v794_v0 }
  0x53   : > { %648 = vmatprep.subr.bf16.mxu0 %v794_v0 }
  0x55   : > { %671 = vmatpush3.bf16.msra.mxu1 %v670_v30 }
  0x56   : > { %650 = vmatpush3.bf16.msra.mxu0 %v649_v27  ;;  %672 = vmatprep.subr.bf16.mxu1 %v794_v0 }
  0x57   : > { %651 = vmatprep.subr.bf16.mxu0 %v794_v0 }
  0x59   : > { %674 = vmatpush3.bf16.msra.mxu1 %v673_v36 }
  0x5a   : > { %653 = vmatpush3.bf16.msra.mxu0 %v652_v33  ;;  %675 = vmatprep.subr.bf16.mxu1 %v794_v0 }
  0x5b   : > { %654 = vmatprep.subr.bf16.mxu0 %v794_v0 }
  0x5d   : > { %677 = vmatpush3.bf16.msra.mxu1 %v676_v42 }
  0x5e   : > { %656 = vmatpush3.bf16.msra.mxu0 %v655_v39  ;;  %678 = vmatprep.subr.bf16.mxu1 %v794_v0 }
  0x5f   : > { %657 = vmatprep.subr.bf16.mxu0 %v794_v0 }
  0x61   : > { %680 = vmatpush3.bf16.msra.mxu1 %v679_v47 }
  0x62   : > { %659 = vmatpush3.bf16.msra.mxu0 %v658_v43  ;;  %681 = vmatprep.subr.bf16.mxu1 %v794_v0 }
  0x65   : > { %599 = vmatmul.mubr.f32.vlgmr.msra.gmra.mrb[0].mxu0 %v250_v44  ;;  %683 = vmatpush3.bf16.msra.mxu1 %v682_v50 }
 0x138   : > { %v340_v52 = vpop.f32.mrb[0].mxu0 }
 0x139   : > { %v341_v53 = vadd.f32 %v528_v51, %v340_v52  ;;  %v600_v54 = vpop.f32.mrb[1].mxu0 }
 0x13b   : > { %v344_v55 = vmul.f32 0.01, %v341_v53 }
 0x13d   : > { %v345_v56 = vmax.f32 %v341_v53, %v344_v55 }
 0x13f   : > { %634 = vmatmul.mubr.f32.vlgmr.msra.gmra.mrb[0].mxu1 %v345_v56 }
 0x212   : > { %v435_v58 = vpop.f32.mrb[0].mxu1 }
 0x213   : > { %v436_v59 = vadd.f32 %v529_v57, %v435_v58  ;;  %v635_v60 = vpop.f32.mrb[1].mxu1 }
 0x215   : > { %v439_v61 = vmul.f32 0.01, %v436_v59 }
 0x217   : > { %v440_v62 = vmax.f32 %v436_v59, %v439_v61 }
 0x219   : > { %441 = vst [vmem:[%s249_s10] sm:$0xff] %v440_v62 }
 0x21a PF: > { %s17_s18 = sadd.s32 1, %s788_s18  }
 0x21b   : > { %p14_p9 = scmp.ge.s32.totalorder %s17_s18, 5  }
 0x21d   :  { %16 = sbr.rel (!%p14_p9) target bundleno = 2 (0x2), region = 79 }
 0x224   :  { %461 = vsyncpa [#allocation3], 1 }
 0x225   :  { %463 = vsyncpa [#allocation3 + $0x1], 1 }
 0x226   :  { %464 = vsyncpa [#allocation5], 1 }

</bundles_post_ra>
